<compile_context>
chip_gen: v7x
topology: tpu7x:2x2x1
jax: 0.10.0
libtpu: 0.0.40
codegen_flags: <defaults>
</compile_context>

<pallas_src>
from functools import partial

import jax
import jax.numpy as jnp
from jax.experimental import pallas as pl
from jax.experimental.pallas import tpu as pltpu


def _pad8(n):
    return -(-n // 8) * 8


def _vmem_cap_bytes():
    """Conservative VMEM cap: 48 MiB everywhere, ~100 MiB on chips known to have 128 MiB."""
    try:
        kind = jax.devices()[0].device_kind.lower()
    except Exception:
        return 48 << 20
    if any(tag in kind for tag in ("v5 lite", "v5e", "v5litepod", "v6 lite", "v6e")):
        return 100 << 20
    return 48 << 20          # v7x (64 MiB physical VMEM) and anything unrecognized


def _choose_tile_m(m, in_ch, out_ch, itemsize, max_tile, budget):
    """Largest multiple of 128 that divides m, fits the per-step VMEM budget, <= max_tile."""
    per_lane = 2 * itemsize * (_pad8(in_ch) + _pad8(out_ch))   # double-buffered x + out
    cap = min(max_tile, max(128, budget // max(per_lane, 1)))
    best = None
    for t in range(128, min(m, cap) + 1, 128):
        if m % t == 0:
            best = t
    return best


# ---------------------------------- kernels ----------------------------------

def _gl_tile_kernel(x_ref, w_ref, b_ref, o_ref):
    # x_ref: [1, C, TILE_M]  w_ref: [1, O, C]  b_ref: [1, O, 1] (f32)  o_ref: [1, O, TILE_M]
    acc = jnp.dot(w_ref[0], x_ref[0], preferred_element_type=jnp.float32)   # MXU, f32 acc
    acc = acc + b_ref[0]                                                    # [O, 1] broadcast
    o_ref[0] = acc.astype(o_ref.dtype)


def _gl_batch_kernel(x_ref, w_ref, b_ref, o_ref, *, groups):
    # Fallback (M has no multiple-of-128 divisor): whole batch element per grid step.
    # x_ref: [1, C, G, M]  w_ref: [G, O, C]  b_ref: [G, O, 1] (f32)  o_ref: [1, G, O, M]
    for g in range(groups):
        acc = jnp.dot(w_ref[g], x_ref[0, :, g, :], preferred_element_type=jnp.float32)
        o_ref[0, g] = (acc + b_ref[g]).astype(o_ref.dtype)


# ---------------------------------- wrapper ----------------------------------

@partial(jax.jit, static_argnames=("groups", "is_reshape", "max_tile_m"))
def group_linear(x, weight, bias=None, *, groups, is_reshape=False, max_tile_m=2048):
    """weight: [out_channels*groups, in_channels, 1, 1] (PyTorch grouped Conv2d layout)."""
    og, in_ch, kh, kw = weight.shape
    assert kh == 1 and kw == 1 and og % groups == 0
    out_ch = og // groups

    if is_reshape:
        b_dim, c_dim, g_dim, n_dim, fg = x.shape
        assert g_dim == groups and c_dim == in_ch
        x5 = x                                                   # already [B, C, G, N, Fg]
    else:
        b_dim, c_dim, n_dim, f_dim = x.shape
        assert c_dim == in_ch and f_dim % groups == 0
        fg = f_dim // groups
        # The module's own x.reshape(B, C, N, G, Fg).transpose(2, 3), done once here.
        x5 = jnp.swapaxes(x.reshape(b_dim, c_dim, n_dim, groups, fg), 2, 3)

    m = n_dim * fg
    dtype = x5.dtype
    itemsize = jnp.dtype(dtype).itemsize

    w_goc = weight.reshape(groups, out_ch, in_ch).astype(dtype)             # [G, O, C]
    if bias is None:
        b_go1 = jnp.zeros((groups, out_ch, 1), jnp.float32)
    else:
        b_go1 = bias.reshape(groups, out_ch, 1).astype(jnp.float32)         # f32 in-kernel

    flops = 2 * b_dim * groups * out_ch * in_ch * m
    bytes_accessed = (itemsize * (x5.size + w_goc.size + b_dim * groups * out_ch * m)
                      + b_go1.size * 4)
    cost = pl.CostEstimate(flops=flops, transcendentals=0, bytes_accessed=bytes_accessed)

    vmem_cap = _vmem_cap_bytes()
    w_bytes = 2 * (w_goc.size * itemsize + b_go1.size * 4)
    tile_m = _choose_tile_m(m, in_ch, out_ch, itemsize, max_tile_m, budget=vmem_cap // 2)

    if tile_m is not None:
        # ---- main path: lane-dense [C, TILE_M] x [O, C] per (b, g, m-tile) grid step ----
        mt = m // tile_m
        xk = x5.reshape(b_dim, in_ch, groups * m)                # free reshape, G-major
        blk_bytes = 2 * itemsize * tile_m * (_pad8(in_ch) + _pad8(out_ch))
        vmem_limit = int(min(max(blk_bytes + w_bytes + (8 << 20), 32 << 20), vmem_cap))
        out = pl.pallas_call(
            _gl_tile_kernel,
            out_shape=jax.ShapeDtypeStruct((b_dim, out_ch, groups * m), dtype),
            grid=(b_dim, groups, mt),
            in_specs=[
                pl.BlockSpec((1, in_ch, tile_m), lambda b, g, t: (b, 0, g * mt + t)),
                pl.BlockSpec((1, out_ch, in_ch), lambda b, g, t: (g, 0, 0)),
                pl.BlockSpec((1, out_ch, 1), lambda b, g, t: (g, 0, 0)),
            ],
            out_specs=pl.BlockSpec((1, out_ch, tile_m), lambda b, g, t: (b, 0, g * mt + t)),
            compiler_params=pltpu.CompilerParams(
                dimension_semantics=("parallel", "parallel", "parallel"),
                vmem_limit_bytes=vmem_limit),
            cost_estimate=cost,
        )(xk, w_goc, b_go1)
        return out.reshape(b_dim, out_ch, groups, n_dim, fg)     # free split of last dim

    # ---- fallback: awkward M -> whole-slab blocks (full trailing dims stay layout-legal) ----
    xk = x5.reshape(b_dim, in_ch, groups, m)
    m_pad = -(-m // 128) * 128
    need = 2 * itemsize * (in_ch * _pad8(groups) + groups * _pad8(out_ch)) * m_pad
    vmem_limit = int(min(max(need + w_bytes + (8 << 20), 32 << 20), vmem_cap))
    out = pl.pallas_call(
        partial(_gl_batch_kernel, groups=groups),
        out_shape=jax.ShapeDtypeStruct((b_dim, groups, out_ch, m), dtype),
        grid=(b_dim,),
        in_specs=[
            pl.BlockSpec((1, in_ch, groups, m), lambda b: (b, 0, 0, 0)),
            pl.BlockSpec((groups, out_ch, in_ch), lambda b: (0, 0, 0)),
            pl.BlockSpec((groups, out_ch, 1), lambda b: (0, 0, 0)),
        ],
        out_specs=pl.BlockSpec((1, groups, out_ch, m), lambda b: (b, 0, 0, 0)),
        compiler_params=pltpu.CompilerParams(
            dimension_semantics=("parallel",), vmem_limit_bytes=vmem_limit),
        cost_estimate=cost,
    )(xk, w_goc, b_go1)
    return jnp.swapaxes(out.reshape(b_dim, groups, out_ch, n_dim, fg), 1, 2)


# ---------------------------------- reference ----------------------------------

def _reference(x, weight, bias, groups, is_reshape):
    og, in_ch = weight.shape[0], weight.shape[1]
    out_ch = og // groups
    w = weight.reshape(groups, out_ch, in_ch)
    if is_reshape:
        x5 = x                                                    # [B, C, G, N, Fg]
    else:
        b_dim, c_dim, n_dim, f_dim = x.shape
        x5 = jnp.swapaxes(x.reshape(b_dim, c_dim, n_dim, groups, f_dim // groups), 2, 3)
    out = jnp.einsum("goc,bcgnf->bognf", w, x5,
                     precision=jax.lax.Precision.HIGHEST)         # [B, O, G, N, Fg]
    if bias is not None:
        out = out + jnp.transpose(bias.reshape(groups, out_ch))[None, :, :, None, None]
    return out


if __name__ == "__main__":
    key = jax.random.PRNGKey(0)
    B, C, N, F = 2, 4, 16, 32       # batch, in_channels, nodes, features
    G, O = 2, 8                     # groups, out_channels
    Fg = F // G

    k1, k2, k3, k4 = jax.random.split(key, 4)
    x = jax.random.normal(k1, (B, C, N, F), jnp.float32)
    weight = 0.1 * jax.random.normal(k2, (O * G, C, 1, 1), jnp.float32)   # Conv2d weight
    bias = 0.1 * jax.random.normal(k3, (O * G,), jnp.float32)             # Conv2d bias
    x_pre = jax.random.normal(k4, (B, C, G, N, Fg), jnp.float32)          # is_reshape=True input

    # 1) is_reshape=False, bias disabled (module default bias=False).
    out1 = jax.block_until_ready(group_linear(x, weight, None, groups=G, is_reshape=False))
    ref1 = _reference(x, weight, None, G, False)
    assert out1.shape == (B, O, G, N, Fg)
    assert jnp.allclose(out1, ref1, atol=1e-3, rtol=1e-3)

    # 2) is_reshape=True, with bias.
    out2 = jax.block_until_ready(group_linear(x_pre, weight, bias, groups=G, is_reshape=True))
    ref2 = _reference(x_pre, weight, bias, G, True)
    assert out2.shape == (B, O, G, N, Fg)
    assert jnp.allclose(out2, ref2, atol=1e-3, rtol=1e-3)

    # 3) Exercise the multi-tile-M grid path (TILE_M=128 -> 2 tiles per group, 8 grid steps).
    out3 = jax.block_until_ready(
        group_linear(x, weight, bias, groups=G, is_reshape=False, max_tile_m=128))
    ref3 = _reference(x, weight, bias, G, False)
    assert out3.shape == (B, O, G, N, Fg)
    assert jnp.allclose(out3, ref3, atol=1e-3, rtol=1e-3)

    print("KERNEL_OK")
</pallas_src>

<mosaic_0001>
module attributes {stable_mosaic.version = 11 : i64} {
  func.func @_gl_tile_kernel(%arg0: i32, %arg1: i32, %arg2: i32, %arg3: memref<1x4x256xf32, #tpu.memory_space<vmem>>, %arg4: memref<1x8x4xf32, #tpu.memory_space<vmem>>, %arg5: memref<1x8x1xf32, #tpu.memory_space<vmem>>, %arg6: memref<1x8x256xf32, #tpu.memory_space<vmem>>) attributes {dimension_semantics = [#tpu.dimension_semantics<parallel>, #tpu.dimension_semantics<parallel>, #tpu.dimension_semantics<parallel>], iteration_bounds = array<i64: 2, 2, 1>, scalar_prefetch = 0 : i64, scratch_operands = 0 : i64, tpu.core_type = #tpu.core_type<tc>, window_params = [{transform_indices = @transform_0, window_bounds = array<i64: 1, 4, 256>}, {transform_indices = @transform_1, window_bounds = array<i64: 1, 8, 4>}, {transform_indices = @transform_2, window_bounds = array<i64: 1, 8, 1>}, {transform_indices = @transform_3, window_bounds = array<i64: 1, 8, 256>}]} {
    %c0 = arith.constant 0 : index
    %c0_0 = arith.constant 0 : index
    %c0_1 = arith.constant 0 : index
    %0 = vector.load %arg4[%c0, %c0_0, %c0_1] : memref<1x8x4xf32, #tpu.memory_space<vmem>>, vector<1x8x4xf32>
    %1 = vector.shape_cast %0 : vector<1x8x4xf32> to vector<8x4xf32>
    %c0_2 = arith.constant 0 : index
    %c0_3 = arith.constant 0 : index
    %c0_4 = arith.constant 0 : index
    %2 = vector.load %arg3[%c0_2, %c0_3, %c0_4] : memref<1x4x256xf32, #tpu.memory_space<vmem>>, vector<1x4x256xf32>
    %3 = vector.shape_cast %2 : vector<1x4x256xf32> to vector<4x256xf32>
    %cst = arith.constant dense<0.000000e+00> : vector<8x256xf32>
    %4 = tpu.matmul %1, %3, %cst {dimension_numbers = #tpu.dot_dimension_numbers<[1], [0], [0], [1], [0, 0, 1, 1], [], []>} : vector<8x4xf32>, vector<4x256xf32>, vector<8x256xf32> -> vector<8x256xf32>
    %c0_5 = arith.constant 0 : index
    %c0_6 = arith.constant 0 : index
    %c0_7 = arith.constant 0 : index
    %5 = vector.load %arg5[%c0_5, %c0_6, %c0_7] : memref<1x8x1xf32, #tpu.memory_space<vmem>>, vector<1x8x1xf32>
    %6 = vector.shape_cast %5 : vector<1x8x1xf32> to vector<8x1xf32>
    %7 = vector.broadcast %6 : vector<8x1xf32> to vector<8x256xf32>
    %8 = arith.addf %4, %7 : vector<8x256xf32>
    %c0_8 = arith.constant 0 : index
    %c0_9 = arith.constant 0 : index
    %c0_10 = arith.constant 0 : index
    %9 = vector.load %arg6[%c0_8, %c0_9, %c0_10] : memref<1x8x256xf32, #tpu.memory_space<vmem>>, vector<1x8x256xf32>
    %10 = vector.shape_cast %9 : vector<1x8x256xf32> to vector<8x256xf32>
    %11 = vector.shape_cast %8 : vector<8x256xf32> to vector<1x8x256xf32>
    tpu.vector_store %arg6[%c0_8, %c0_9, %c0_10], %11 {strides = array<i32>} : memref<1x8x256xf32, #tpu.memory_space<vmem>>, vector<1x8x256xf32>,
    return
  }
  func.func @transform_0(%arg0: i32, %arg1: i32, %arg2: i32) -> (i32, i32, i32) {
    %c1_i32 = arith.constant 1 : i32
    %0 = arith.muli %arg1, %c1_i32 : i32
    %1 = arith.addi %0, %arg2 : i32
    %c0_i32 = arith.constant 0 : i32
    %c0_i32_0 = arith.constant 0 : i32
    return %arg0, %c0_i32, %1 : i32, i32, i32
  }
  func.func @transform_1(%arg0: i32, %arg1: i32, %arg2: i32) -> (i32, i32, i32) {
    %c0_i32 = arith.constant 0 : i32
    %c0_i32_0 = arith.constant 0 : i32
    %c0_i32_1 = arith.constant 0 : i32
    return %arg1, %c0_i32, %c0_i32_0 : i32, i32, i32
  }
  func.func @transform_2(%arg0: i32, %arg1: i32, %arg2: i32) -> (i32, i32, i32) {
    %c0_i32 = arith.constant 0 : i32
    %c0_i32_0 = arith.constant 0 : i32
    %c0_i32_1 = arith.constant 0 : i32
    return %arg1, %c0_i32, %c0_i32_0 : i32, i32, i32
  }
  func.func @transform_3(%arg0: i32, %arg1: i32, %arg2: i32) -> (i32, i32, i32) {
    %c1_i32 = arith.constant 1 : i32
    %0 = arith.muli %arg1, %c1_i32 : i32
    %1 = arith.addi %0, %arg2 : i32
    %c0_i32 = arith.constant 0 : i32
    %c0_i32_0 = arith.constant 0 : i32
    return %arg0, %c0_i32, %1 : i32, i32, i32
  }
}

</mosaic_0001>

<bundles_post_ra>
// kernel: group_linear.1
= control target key start
LH: loop header
LB: loop body
LE: loop exit
PB: predicated region body
PF: predicated region fallthrough
CT: control target
= control target key end

     0   :  { %s599_s12 = smov 0   ;;  %s601_s13 = smov 0   ;;  %s661_s0 = inlined_call_operand.vmem [shape: f32[2,4,512], index: 0, kind: input, shape index: {}]   ;;  %s662_s1 = inlined_call_operand.vmem [shape: f32[2,8,4], index: 1, kind: input, shape index: {}]   ;;  %s663_s2 = inlined_call_operand.vmem [shape: f32[2,8,1], index: 2, kind: input, shape index: {}]   ;;  %s664_s3 = inlined_call_operand.vmem [shape: f32[2,8,512], index: 3, kind: output, shape index: {}]  }
   0x1   :  { %s603_s14 = smov 0   ;;  %s605_s15 = smov 0  }
   0x2   :  { %s607_s16 = smov 0  }
   0x3 LB: > { %s28_s17 = sadd.s32 1, %s567_s14  ;;  %s32_s18 = sadd.s32 1, %s571_s15  ;;  %s575_s16 = sphi %s607_s16, %s13_s16   ;;  %s571_s15 = sphi %s605_s15, %s668_s15   ;;  %s567_s14 = sphi %s603_s14, %s667_s14   ;;  %s563_s13 = sphi %s601_s13, %s666_s13   ;;  %s559_s12 = sphi %s599_s12, %s665_s12  }
   0x4   : > { %p30_p0 = scmp.ge.s32.totalorder %s28_s17, 2  ;;  %p479_p1 = scmp.ge.s32.totalorder %s575_s16, 1 }
   0x5   : > { %p189_p2 = scmp.lt.s32.totalorder %s575_s16, 5 }
   0x6   : > { %s670_s17 = smov (%p30_p0, %s28_s17), 0  ;;  %s672_s18 = smov (!%p30_p0, %s32_s18), %s571_s15 }
   0x7   : > { %p190_p3 = pnand %p479_p1, %p189_p2  ;;  %p34_p4 = scmp.ge.s32.totalorder %s672_s18, 2 }
   0x8   : > { %s480_s19 = sshll.u32 (!%p190_p3), %s559_s12, 1  ;;  %p233_p5 = scmp.lt.s32.totalorder (!%p190_p3), %s563_s13, 1  ;;  %v577_v0 = vmov (!%p190_p3), 0.0   ;;  %v578_v1 = vmov (!%p190_p3), 0   ;;  %vm277_vm0 = vcmask (!%p190_p3), 1043456   ;;  %vm273_vm1 = vcmask (!%p190_p3), 31744  }
   0x9   : > { %s674_s18 = smov (%p34_p4, %s672_s18), 0  ;;  %193 = sbr.rel (%p190_p3) target bundleno = 242 (0xf2), region = 32 }
   0xa   : > { %p235_p6 = scmp.lt.s32.totalorder (!%p190_p3), %s480_s19, 3  ;;  %346 = vmatprep.mubr.f32.mxu0 (!%p190_p3), %v577_v0  ;;  %535 = vset.pattern.permute.xlu0 (!%p190_p3), %v578_v1  ;;  %p243_p7 = scmp.lt.s32.totalorder (!%p190_p3), %s559_s12, 1 }
  0x10   : > { %s676_s13 = smov (!%p233_p5, %s563_s13), 1  ;;  %s678_s19 = smov (!%p235_p6, %s480_s19), 3 }
  0x11   : > { %s481_s20 = sshll.u32 %s676_s13, 2  ;;  %s680_s12 = smov (!%p243_p7, %s559_s12), 1 }
  0x12   : > { %s238_s21 = sadd.s32 %s481_s20, %s678_s19  ;;  %s483_s26 = sshll.u32 %s680_s12, 3 }
  0x13   : > { %s482_s22 = sshll.u32 %s238_s21, 2  ;;  %s246_s29 = scalar_lea.vmem %s662_s1, %s483_s26 }
  0x14   : > { %s240_s25 = scalar_lea.vmem %s661_s0, %s482_s22  ;;  %s250_s5 = scalar_lea.vmem %s663_s2, %s483_s26  ;;  %v263_v4 = vld [vmem:[%s246_s29] sm:$0xff] }
  0x15   : > { %v264_v2 = vld [vmem:[%s240_s25] sm:$0xff]  ;;  %s487_s6 = sshll.u32 %s238_s21, 3 }
  0x16   : > { %v272_v3 = vcombine.high %v264_v2, %v264_v2  ;;  %v265_v5 = vld [vmem:[%s250_s5] sm:$0xff]  ;;  %s260_s9 = scalar_lea.vmem %s664_s3, %s487_s6 }
  0x17   : > { %268 = vperm.xlu0 %535, %v265_v5  }
  0x18   : > { %488 = vmatprep.subr.msk.mxu0 %vm277_vm0, %v272_v3 }
  0x19   : > { %489 = vmatpush1.msk.msra.mxu0 %vm277_vm0, %v264_v2 }
  0x1a   : > { %490 = vmatmul.mubr.msk.f32.vlgmr.msra.gmra.mrb[0].mxu0 %vm273_vm1, %v263_v4 }
  0x96   : > { %v269_v6 = vpop.permute.xlu0 %268 }
  0xed   : > { %v348_v7 = vpop.f32.mrb[0].mxu0 }
  0xee   : > { %v349_v8 = vadd.f32 %v348_v7, %v269_v6  ;;  %v350_v9 = vpop.f32.mrb[1].mxu0 }
  0xef   : > { %v351_v10 = vadd.f32 %v350_v9, %v269_v6 }
  0xf0   : > { %353 = vst [vmem:[%s260_s9] sm:$0xff] %v349_v8 }
  0xf1   : > { %354 = vst [vmem:[%s260_s9 + $0x8] sm:$0xff] %v351_v10 }
  0xf2 PF: > { %s13_s16 = sadd.s32 1, %s575_s16   ;;  %s665_s12 = smov %s567_s14 }
  0xf3   : > { %p10_p8 = scmp.ge.s32.totalorder %s13_s16, 6   ;;  %s666_s13 = smov %s571_s15 }
  0xf4   : > { %s667_s14 = smov %s670_s17  ;;  %s668_s15 = smov %s674_s18 }
  0xf5   :  { %12 = sbr.rel (!%p10_p8) target bundleno = 3 (0x3), region = 68 }

</bundles_post_ra>
